<compile_context>
chip_gen: v6e
topology: v6e:2x2x1
jax: 0.10.0
libtpu: 0.0.40
codegen_flags: <defaults>
</compile_context>

<pallas_src>
import functools
import math

import jax
import jax.numpy as jnp
from jax.experimental import pallas as pl
from jax.experimental.pallas import tpu as pltpu


def _round_up(a, b):
    return (a + b - 1) // b * b


def _vmem_limit_bytes():
    """Generation-aware scoped-VMEM request, leaving headroom for compiler scratch."""
    phys = 128 * 1024 * 1024
    try:
        phys = int(getattr(pltpu.get_tpu_info(), "vmem_capacity_bytes", phys))
    except Exception:
        pass  # interpret mode / no TPU info: assume 128 MiB-class part
    # ~48 MiB on v7x (64 MiB physical), ~96 MiB on v5e/v6e (128 MiB physical).
    return min(phys * 3 // 4, 96 * 1024 * 1024)


def _pick_tq(N, M_p, in_dim, vmem_limit, k_resident_bytes, out_itemsize):
    """Budget-driven query-row tile size (multiple of 16)."""
    # Per query row of the main kernel (worst case simultaneously live):
    #   2x output double-buffer + ~3x f32 logit/exp slabs + 2x x-tile buffer.
    per_row = (2 * out_itemsize + 12) * M_p + 8 * in_dim
    avail = vmem_limit - 2 * k_resident_bytes - (2 << 20)  # K + weights/bias slack
    tq = max(16, min(1024, (avail // per_row) // 16 * 16))
    tq = min(tq, _round_up(N, 16))
    # Keep >= 2 grid steps when it doesn't force tiny tiles (the "parallel" axis
    # only engages v7x's second TensorCore if the grid has >= 2 steps).
    tq = min(tq, max(256, _round_up((N + 1) // 2, 16)))
    return int(tq)


def _key_proj_kernel(y_ref, wk_ref, bkT_ref, kT_ref):
    # kT[o, m] = sum_i wk[i, o] * y[m, i] + bk[o]
    # Contraction dims chosen so the MXU emits the TRANSPOSED key projection
    # (out_dim, TK) directly — no per-query-tile transposed-operand handling later.
    kT = jax.lax.dot_general(
        wk_ref[...], y_ref[...],
        dimension_numbers=(((0,), (1,)), ((), ())),
        preferred_element_type=jnp.float32,
    )
    kT_ref[...] = (kT + bkT_ref[...]).astype(kT_ref.dtype)


def _attention_kernel(x_ref, wq_ref, bq_ref, kT_ref, mask_ref, out_ref, *, apply_mask):
    # Query projection for this row tile (f32 MXU accumulation + f32 bias add).
    q = jnp.dot(x_ref[...], wq_ref[...], preferred_element_type=jnp.float32)
    q = (q + bq_ref[...]).astype(kT_ref.dtype)   # match K^T operand dtype

    # energy = q @ K^T : canonical lane-dense (tq, d) @ (d, M_p) matmul.
    energy = jnp.dot(q, kT_ref[...], preferred_element_type=jnp.float32)

    # Padded key columns: single broadcast add of a precomputed (1, M_p) bias
    # (0 for valid columns, -1e30 for padding) — vanishes under the softmax.
    if apply_mask:
        energy = energy + mask_ref[...]

    # Numerically stable softmax over keys. EXACT reciprocal on the (tq, 1)
    # denominator so rows sum to 1 (approx=True drifts at the ~1e-3 level).
    mx = jnp.max(energy, axis=-1, keepdims=True)
    e = jnp.exp(energy - mx)
    denom = jnp.sum(e, axis=-1, keepdims=True)
    out_ref[...] = (e * pl.reciprocal(denom)).astype(out_ref.dtype)


def attention_pallas(x, y, wq, bq, wk, bk, *, tq=None,
                     compute_dtype=jnp.float32, out_dtype=jnp.float32,
                     return_padded=False):
    """x: (N, in_dim), y: (M, in_dim), wq/wk: (in_dim, out_dim), bq/bk: (out_dim,).

    compute_dtype: MXU operand dtype (f32 or bf16); accumulation, bias add and the
    softmax always run in f32. out_dtype: storage dtype of the attention matrix
    (bf16 halves the dominant HBM write stream). return_padded=True returns the
    padded (N_p, M_p) buffer plus (N, M) so callers can avoid the slice copy.
    """
    N, in_dim = x.shape
    M, _ = y.shape
    out_dim = wq.shape[1]

    csize = jnp.dtype(compute_dtype).itemsize
    osize = jnp.dtype(out_dtype).itemsize

    # Lane-dense output: pad keys to a multiple of 128 (masked additively in-kernel).
    M_p = _round_up(M, 128)

    vmem_limit = _vmem_limit_bytes()
    k_bytes = out_dim * M_p * csize  # resident K^T footprint

    if tq is None:
        tq = _pick_tq(N, M_p, in_dim, vmem_limit, k_bytes, osize)
    assert tq % 16 == 0 and tq > 0, "tq must be a positive multiple of 16"
    N_p = _round_up(N, tq)

    # Key-projection tile: full padded extent when it fits (kills per-step overhead).
    TK = M_p if M_p <= 1024 else math.gcd(M_p, 1024)

    # Row padding only; feature dims stay full-extent (legal, avoids extra HBM traffic).
    xp = jnp.pad(x, ((0, N_p - N), (0, 0))) if N_p != N else x
    yp = jnp.pad(y, ((0, M_p - M), (0, 0))) if M_p != M else y
    xp = xp.astype(compute_dtype)
    yp = yp.astype(compute_dtype)
    wq_c = wq.astype(compute_dtype)
    wk_c = wk.astype(compute_dtype)
    bq2 = bq.reshape(1, out_dim).astype(jnp.float32)
    bkT = bk.reshape(out_dim, 1).astype(jnp.float32)

    apply_mask = (M_p != M)
    mask = jnp.where(jnp.arange(M_p) < M,
                     jnp.float32(0.0), jnp.float32(-1e30)).reshape(1, M_p)

    # ---- Kernel 1: key projection -> K^T (computed once, not per query tile) ----
    ce1 = pl.CostEstimate(
        flops=2 * M_p * in_dim * out_dim,
        transcendentals=0,
        bytes_accessed=(M_p * in_dim + in_dim * out_dim + out_dim * M_p) * csize
        + out_dim * 4,
    )
    kT = pl.pallas_call(
        _key_proj_kernel,
        out_shape=jax.ShapeDtypeStruct((out_dim, M_p), compute_dtype),
        grid=(M_p // TK,),
        in_specs=[
            pl.BlockSpec((TK, in_dim), lambda i: (i, 0)),       # y row tile
            pl.BlockSpec((in_dim, out_dim), lambda i: (0, 0)),  # Wk resident
            pl.BlockSpec((out_dim, 1), lambda i: (0, 0)),       # bk (column) resident
        ],
        out_specs=pl.BlockSpec((out_dim, TK), lambda i: (0, i)),
        compiler_params=pltpu.CompilerParams(dimension_semantics=("parallel",)),
        cost_estimate=ce1,
    )(yp, wk_c, bkT)

    # ---- Kernel 2: query projection + energy + softmax, gridded over query rows ----
    kernel = functools.partial(_attention_kernel, apply_mask=apply_mask)
    ce2 = pl.CostEstimate(
        flops=2 * N_p * in_dim * out_dim + 2 * N_p * M_p * out_dim,
        transcendentals=N_p * M_p,
        bytes_accessed=(N_p * in_dim + in_dim * out_dim + out_dim * M_p) * csize
        + (out_dim + M_p) * 4 + N_p * M_p * osize,
    )

    def call_main(single_buffer_invariants):
        def resident(shape):
            # Grid-invariant blocks (index_map always (0, 0)): request a single
            # buffer instead of the default double-buffer to halve their VMEM.
            if single_buffer_invariants:
                return pl.BlockSpec(shape, lambda i: (0, 0),
                                    pipeline_mode=pl.Buffered(1))
            return pl.BlockSpec(shape, lambda i: (0, 0))

        out = pl.pallas_call(
            kernel,
            out_shape=jax.ShapeDtypeStruct((N_p, M_p), out_dtype),
            grid=(N_p // tq,),
            in_specs=[
                pl.BlockSpec((tq, in_dim), lambda i: (i, 0)),   # x row tile (pipelined)
                resident((in_dim, out_dim)),                    # Wq resident
                resident((1, out_dim)),                         # bq resident
                resident((out_dim, M_p)),                       # K^T resident
                resident((1, M_p)),                             # additive pad mask
            ],
            out_specs=pl.BlockSpec((tq, M_p), lambda i: (i, 0)),  # lane-dense output
            compiler_params=pltpu.CompilerParams(
                dimension_semantics=("parallel",),              # megacore on v7x
                vmem_limit_bytes=vmem_limit,
            ),
            cost_estimate=ce2,
        )(xp, wq_c, bq2, kT, mask)
        return jax.block_until_ready(out)

    try:
        out = call_main(True)
    except Exception:
        # pl.Buffered(1) single-buffering unsupported on this jax/backend:
        # fall back to default double-buffering of the grid-invariant inputs.
        out = call_main(False)

    # TODO(synk): for very large M, switch to a flash-style online softmax on a
    # 2-D (query, key) grid so the in-flight slab is (tq, tk) instead of (tq, M_p).
    if return_padded:
        return out, (N, M)
    return out[:N, :M]


def _reference(x, y, wq, bq, wk, bk):
    q = x @ wq + bq
    k = y @ wk + bk
    energy = q @ k.T
    energy = energy - jnp.max(energy, axis=-1, keepdims=True)
    e = jnp.exp(energy)
    return e / jnp.sum(e, axis=-1, keepdims=True)


if __name__ == "__main__":
    key = jax.random.PRNGKey(0)
    in_dim, out_dim = 31, 31  # module defaults

    k_wq, k_wk, k_data = jax.random.split(key, 3)
    # weights_init: Linear weight ~ N(0, 0.05), bias = 0.
    # PyTorch weight is (out_dim, in_dim); we store it transposed as (in_dim, out_dim).
    wq = (0.05 * jax.random.normal(k_wq, (out_dim, in_dim), dtype=jnp.float32)).T
    wk = (0.05 * jax.random.normal(k_wk, (out_dim, in_dim), dtype=jnp.float32)).T
    bq = jnp.zeros((out_dim,), dtype=jnp.float32)
    bk = jnp.zeros((out_dim,), dtype=jnp.float32)

    # (N, M, tq, compute_dtype, out_dtype, atol)
    configs = [
        (8, 8, None, jnp.float32, jnp.float32, 1e-3),    # module-default small shapes
        (24, 40, 16, jnp.float32, jnp.float32, 1e-3),    # multi-step query grid + key padding
        (24, 40, 16, jnp.bfloat16, jnp.float32, 2e-2),   # bf16 MXU operand fast path
        (24, 40, None, jnp.float32, jnp.bfloat16, 2e-2), # bf16 output (halved HBM writes)
    ]

    ref = None
    x = y = None
    for idx, (N, M, tq, cd, od, atol) in enumerate(configs):
        k_x, k_y, k_data = jax.random.split(k_data, 3)
        x = jax.random.normal(k_x, (N, in_dim), dtype=jnp.float32)
        y = jax.random.normal(k_y, (M, in_dim), dtype=jnp.float32)

        attn = attention_pallas(x, y, wq, bq, wk, bk, tq=tq,
                                compute_dtype=cd, out_dtype=od)
        attn = jax.block_until_ready(attn).astype(jnp.float32)

        ref = _reference(x, y, wq, bq, wk, bk)
        assert attn.shape == (N, M), f"cfg {idx}: bad shape {attn.shape}"
        assert jnp.allclose(attn, ref, atol=atol, rtol=atol), f"cfg {idx}: mismatch vs reference"
        # Rows must sum to 1 (softmax) — exact reciprocal keeps this tight.
        assert jnp.allclose(jnp.sum(attn, axis=-1), 1.0, atol=max(atol, 1e-3)), (
            f"cfg {idx}: rows not normalized")

    # Padded-layout path (skips the post-kernel slice copy for perf-sensitive callers).
    padded, (n_valid, m_valid) = attention_pallas(x, y, wq, bq, wk, bk, return_padded=True)
    padded = jax.block_until_ready(padded)
    assert padded.shape[0] % 16 == 0 and padded.shape[1] % 128 == 0
    assert jnp.allclose(padded[:n_valid, :m_valid], ref, atol=1e-3, rtol=1e-3)

    print("KERNEL_OK")
</pallas_src>

<mosaic_0001>
module attributes {stable_mosaic.version = 11 : i64} {
  func.func @_key_proj_kernel(%arg0: i32, %arg1: memref<128x31xf32, #tpu.memory_space<vmem>>, %arg2: memref<31x31xf32, #tpu.memory_space<vmem>>, %arg3: memref<31x1xf32, #tpu.memory_space<vmem>>, %arg4: memref<31x128xf32, #tpu.memory_space<vmem>>) attributes {dimension_semantics = [#tpu.dimension_semantics<parallel>], iteration_bounds = array<i64: 1>, scalar_prefetch = 0 : i64, scratch_operands = 0 : i64, tpu.core_type = #tpu.core_type<tc>, window_params = [{transform_indices = @transform_0, window_bounds = array<i64: 128, 31>}, {pipeline_mode = #tpu.pipeline_mode<synchronous>, transform_indices = @transform_1, window_bounds = array<i64: 31, 31>}, {pipeline_mode = #tpu.pipeline_mode<synchronous>, transform_indices = @transform_2, window_bounds = array<i64: 31, 1>}, {transform_indices = @transform_3, window_bounds = array<i64: 31, 128>}]} {
    %c0 = arith.constant 0 : index
    %c0_0 = arith.constant 0 : index
    %0 = vector.load %arg2[%c0, %c0_0] : memref<31x31xf32, #tpu.memory_space<vmem>>, vector<31x31xf32>
    %c0_1 = arith.constant 0 : index
    %c0_2 = arith.constant 0 : index
    %1 = vector.load %arg1[%c0_1, %c0_2] : memref<128x31xf32, #tpu.memory_space<vmem>>, vector<128x31xf32>
    %cst = arith.constant dense<0.000000e+00> : vector<31x128xf32>
    %2 = tpu.matmul %0, %1, %cst {dimension_numbers = #tpu.dot_dimension_numbers<[0], [1], [1], [0], [0, 1, 1, 0], [], []>} : vector<31x31xf32>, vector<128x31xf32>, vector<31x128xf32> -> vector<31x128xf32>
    %c0_3 = arith.constant 0 : index
    %c0_4 = arith.constant 0 : index
    %3 = vector.load %arg3[%c0_3, %c0_4] : memref<31x1xf32, #tpu.memory_space<vmem>>, vector<31x1xf32>
    %4 = vector.broadcast %3 : vector<31x1xf32> to vector<31x128xf32>
    %5 = arith.addf %2, %4 : vector<31x128xf32>
    %c0_5 = arith.constant 0 : index
    %c0_6 = arith.constant 0 : index
    %6 = vector.load %arg4[%c0_5, %c0_6] : memref<31x128xf32, #tpu.memory_space<vmem>>, vector<31x128xf32>
    tpu.vector_store %arg4[%c0_5, %c0_6], %5 {strides = array<i32>} : memref<31x128xf32, #tpu.memory_space<vmem>>, vector<31x128xf32>,
    return
  }
  func.func @transform_0(%arg0: i32) -> (i32, i32) {
    %c0_i32 = arith.constant 0 : i32
    %c0_i32_0 = arith.constant 0 : i32
    return %arg0, %c0_i32 : i32, i32
  }
  func.func @transform_1(%arg0: i32) -> (i32, i32) {
    %c0_i32 = arith.constant 0 : i32
    %c0_i32_0 = arith.constant 0 : i32
    %c0_i32_1 = arith.constant 0 : i32
    return %c0_i32, %c0_i32_0 : i32, i32
  }
  func.func @transform_2(%arg0: i32) -> (i32, i32) {
    %c0_i32 = arith.constant 0 : i32
    %c0_i32_0 = arith.constant 0 : i32
    %c0_i32_1 = arith.constant 0 : i32
    return %c0_i32, %c0_i32_0 : i32, i32
  }
  func.func @transform_3(%arg0: i32) -> (i32, i32) {
    %c0_i32 = arith.constant 0 : i32
    %c0_i32_0 = arith.constant 0 : i32
    return %c0_i32, %arg0 : i32, i32
  }
}

</mosaic_0001>

<bundles_post_ra>
// kernel: tpu_custom_call.1
= control target key start
LH: loop header
LB: loop body
LE: loop exit
PB: predicated region body
PF: predicated region fallthrough
CT: control target
= control target key end

     0   :  { %vm91_vm0 = vcmask 252928   ;;  %s563_s0 = inlined_call_operand.vmem [shape: f32[128,31], index: 0, kind: input, shape index: {}]   ;;  %s564_s1 = inlined_call_operand.vmem [shape: f32[31,31], index: 1, kind: input, shape index: {}]   ;;  %s565_s2 = inlined_call_operand.vmem [shape: f32[31,1], index: 2, kind: input, shape index: {}]   ;;  %s566_s3 = inlined_call_operand.hbm [shape: f32[31,128], index: 3, kind: output, shape index: {}]  }
   0x1   :  { %v15_v0 = vld [vmem:[%s564_s1] sm:$0xff]  ;;  %v34_v1 = vld [vmem:[%s563_s0 + $0x78] sm:$0xff]  ;;  %v33_v2 = vld [vmem:[%s563_s0 + $0x70] sm:$0xff] }
   0x2   :  { %59 = vxpose.xlu0.b32.start [1/4] (short) (narrow) %v15_v0, 32  ;;  %v16_v3 = vld [vmem:[%s564_s1 + $0x8] sm:$0xff]  ;;  %297 = vmatprep.subr.msk.mxu0 %vm91_vm0, %v34_v1  ;;  %v17_v5 = vld [vmem:[%s564_s1 + $0x10] sm:$0xff] }
   0x3   :  { %335 = vmatprep.subr.msk.mxu1 %vm91_vm0, %v34_v1  ;;  %298 = vmatpush3.xpose.msk.msra.mxu0 %vm91_vm0, %v34_v1  ;;  %v32_v4 = vld [vmem:[%s563_s0 + $0x68] sm:$0xff] }
   0x4   :  { %351 = vmatpush3.xpose.msk.msra.mxu1 %vm91_vm0, %v34_v1  ;;  %299 = vmatprep.subr.msk.mxu0 %vm91_vm0, %v33_v2 }
   0x5   :  { %336 = vmatprep.subr.msk.mxu1 %vm91_vm0, %v33_v2 }
   0x6   :  { %60 = vxpose.xlu0.b32.cont [2/4] (short) (narrow) %v16_v3, 32 }
   0x7   :  { %8 = vsyncpa [#allocation3], 0  ;;  %300 = vmatpush3.xpose.msk.msra.mxu0 %vm91_vm0, %v33_v2  ;;  %v31_v6 = vld [vmem:[%s563_s0 + $0x60] sm:$0xff]  ;;  %v18_v7 = vld [vmem:[%s564_s1 + $0x18] sm:$0x7f]  ;;  %v396_v10 = vmov 0  }
   0x8   :  { %352 = vmatpush3.xpose.msk.msra.mxu1 %vm91_vm0, %v33_v2  ;;  %301 = vmatprep.subr.msk.mxu0 %vm91_vm0, %v32_v4  ;;  %v35_v8 = vld [vmem:[%s565_s2] sm:$0xff]  ;;  %v30_v9 = vld [vmem:[%s563_s0 + $0x58] sm:$0xff]  ;;  %v36_v11 = vld [vmem:[%s565_s2 + $0x8] sm:$0xff] }
   0x9   :  { %337 = vmatprep.subr.msk.mxu1 %vm91_vm0, %v32_v4  ;;  %372 = vset.pattern.permute.xlu1 %v396_v10  ;;  %v29_v12 = vld [vmem:[%s563_s0 + $0x50] sm:$0xff]  ;;  %v28_v14 = vld [vmem:[%s563_s0 + $0x48] sm:$0xff]  ;;  %v38_v15 = vld [vmem:[%s565_s2 + $0x18] sm:$0x7f] }
   0xa   :  { %61 = vxpose.xlu0.b32.cont [3/4] (short) (narrow) %v17_v5, 32  ;;  %41 = vperm.xlu1 %372, %v35_v8   ;;  %v37_v13 = vld [vmem:[%s565_s2 + $0x10] sm:$0xff]  ;;  %v27_v16 = vld [vmem:[%s563_s0 + $0x40] sm:$0xff]  ;;  %v26_v17 = vld [vmem:[%s563_s0 + $0x38] sm:$0xff] }
   0xb   :  { %302 = vmatpush3.xpose.msk.msra.mxu0 %vm91_vm0, %v32_v4  ;;  %v25_v18 = vld [vmem:[%s563_s0 + $0x30] sm:$0xff]  ;;  %v24_v19 = vld [vmem:[%s563_s0 + $0x28] sm:$0xff]  ;;  %v23_v20 = vld [vmem:[%s563_s0 + $0x20] sm:$0xff] }
   0xc   :  { %353 = vmatpush3.xpose.msk.msra.mxu1 %vm91_vm0, %v32_v4  ;;  %303 = vmatprep.subr.msk.mxu0 %vm91_vm0, %v31_v6  ;;  %v22_v21 = vld [vmem:[%s563_s0 + $0x18] sm:$0xff]  ;;  %v21_v22 = vld [vmem:[%s563_s0 + $0x10] sm:$0xff]  ;;  %v20_v23 = vld [vmem:[%s563_s0 + $0x8] sm:$0xff] }
   0xd   :  { %338 = vmatprep.subr.msk.mxu1 %vm91_vm0, %v31_v6  ;;  %v19_v24 = vld [vmem:[%s563_s0] sm:$0xff]  ;;  %s397_s0 = smov [#allocation2]  }
   0xe   :  { %62 = vxpose.xlu0.b32.end [4/4] (short) (narrow) %v18_v7, 32  ;;  %46 = vperm.xlu1 %372, %v36_v11   ;;  %s246_s4 = sshll.u32 %s397_s0, 4  ;;  %s247_s4 = int_to_ptr.vmem [resolvable:$true] %s246_s4 }
   0xf   :  { %304 = vmatpush3.xpose.msk.msra.mxu0 %vm91_vm0, %v31_v6  ;;  %s374_s1 = scalar_lea.vmem %s247_s4, 512  ;;  %p379_p1 = scmp.lt.s32.totalorder %s247_s4, %s247_s4 }
  0x10   :  { %354 = vmatpush3.xpose.msk.msra.mxu1 %vm91_vm0, %v31_v6  ;;  %305 = vmatprep.subr.msk.mxu0 %vm91_vm0, %v30_v9  ;;  %p375_p0 = scmp.ne.s32.totalorder %s247_s4, %s374_s1  ;;  %p380_p2 = scmp.lt.s32.totalorder %s374_s1, %s374_s1 }
  0x11   :  { %339 = vmatprep.subr.msk.mxu1 %vm91_vm0, %v30_v9 }
  0x12   :  { %51 = vperm.xlu1 %372, %v37_v13   ;;  %p381_p3 = por %p380_p2, %p379_p1 }
  0x13   :  { %306 = vmatpush3.xpose.msk.msra.mxu0 %vm91_vm0, %v30_v9 }
  0x14   :  { %355 = vmatpush3.xpose.msk.msra.mxu1 %vm91_vm0, %v30_v9  ;;  %307 = vmatprep.subr.msk.mxu0 %vm91_vm0, %v29_v12  ;;  %p382_p4 = pnand %p381_p3, %p375_p0 }
  0x15   :  { %340 = vmatprep.subr.msk.mxu1 %vm91_vm0, %v29_v12 }
  0x16   :  { %56 = vperm.xlu1 %372, %v38_v15  }
  0x17   :  { %308 = vmatpush3.xpose.msk.msra.mxu0 %vm91_vm0, %v29_v12 }
  0x18   :  { %356 = vmatpush3.xpose.msk.msra.mxu1 %vm91_vm0, %v29_v12  ;;  %309 = vmatprep.subr.msk.mxu0 %vm91_vm0, %v28_v14 }
  0x19   :  { %341 = vmatprep.subr.msk.mxu1 %vm91_vm0, %v28_v14 }
  0x1b   :  { %310 = vmatpush3.xpose.msk.msra.mxu0 %vm91_vm0, %v28_v14 }
  0x1c   :  { %357 = vmatpush3.xpose.msk.msra.mxu1 %vm91_vm0, %v28_v14  ;;  %311 = vmatprep.subr.msk.mxu0 %vm91_vm0, %v27_v16 }
  0x1d   :  { %342 = vmatprep.subr.msk.mxu1 %vm91_vm0, %v27_v16 }
  0x1f   :  { %312 = vmatpush3.xpose.msk.msra.mxu0 %vm91_vm0, %v27_v16 }
  0x20   :  { %358 = vmatpush3.xpose.msk.msra.mxu1 %vm91_vm0, %v27_v16  ;;  %313 = vmatprep.subr.msk.mxu0 %vm91_vm0, %v26_v17 }
  0x21   :  { %343 = vmatprep.subr.msk.mxu1 %vm91_vm0, %v26_v17 }
  0x23   :  { %314 = vmatpush3.xpose.msk.msra.mxu0 %vm91_vm0, %v26_v17 }
  0x24   :  { %359 = vmatpush3.xpose.msk.msra.mxu1 %vm91_vm0, %v26_v17  ;;  %315 = vmatprep.subr.msk.mxu0 %vm91_vm0, %v25_v18 }
  0x25   :  { %344 = vmatprep.subr.msk.mxu1 %vm91_vm0, %v25_v18 }
  0x27   :  { %316 = vmatpush3.xpose.msk.msra.mxu0 %vm91_vm0, %v25_v18 }
  0x28   :  { %360 = vmatpush3.xpose.msk.msra.mxu1 %vm91_vm0, %v25_v18  ;;  %317 = vmatprep.subr.msk.mxu0 %vm91_vm0, %v24_v19 }
  0x29   :  { %345 = vmatprep.subr.msk.mxu1 %vm91_vm0, %v24_v19 }
  0x2b   :  { %318 = vmatpush3.xpose.msk.msra.mxu0 %vm91_vm0, %v24_v19 }
  0x2c   :  { %361 = vmatpush3.xpose.msk.msra.mxu1 %vm91_vm0, %v24_v19  ;;  %319 = vmatprep.subr.msk.mxu0 %vm91_vm0, %v23_v20 }
  0x2d   :  { %346 = vmatprep.subr.msk.mxu1 %vm91_vm0, %v23_v20 }
  0x2f   :  { %320 = vmatpush3.xpose.msk.msra.mxu0 %vm91_vm0, %v23_v20 }
  0x30   :  { %362 = vmatpush3.xpose.msk.msra.mxu1 %vm91_vm0, %v23_v20  ;;  %321 = vmatprep.subr.msk.mxu0 %vm91_vm0, %v22_v21 }
  0x31   :  { %347 = vmatprep.subr.msk.mxu1 %vm91_vm0, %v22_v21 }
  0x33   :  { %322 = vmatpush3.xpose.msk.msra.mxu0 %vm91_vm0, %v22_v21 }
  0x34   :  { %363 = vmatpush3.xpose.msk.msra.mxu1 %vm91_vm0, %v22_v21  ;;  %323 = vmatprep.subr.msk.mxu0 %vm91_vm0, %v21_v22 }
  0x35   :  { %348 = vmatprep.subr.msk.mxu1 %vm91_vm0, %v21_v22 }
  0x37   :  { %373 = vset.pattern.permute.xlu0 %v396_v10  ;;  %324 = vmatpush3.xpose.msk.msra.mxu0 %vm91_vm0, %v21_v22 }
  0x38   :  { %364 = vmatpush3.xpose.msk.msra.mxu1 %vm91_vm0, %v21_v22  ;;  %325 = vmatprep.subr.msk.mxu0 %vm91_vm0, %v20_v23 }
  0x39   :  { %349 = vmatprep.subr.msk.mxu1 %vm91_vm0, %v20_v23 }
  0x3b   :  { %326 = vmatpush3.xpose.msk.msra.mxu0 %vm91_vm0, %v20_v23 }
  0x3c   :  { %365 = vmatpush3.xpose.msk.msra.mxu1 %vm91_vm0, %v20_v23  ;;  %327 = vmatprep.subr.msk.mxu0 %vm91_vm0, %v19_v24 }
  0x3d   :  { %350 = vmatprep.subr.msk.mxu1 %vm91_vm0, %v19_v24 }
  0x3f   :  { %328 = vmatpush3.xpose.msk.msra.mxu0 %vm91_vm0, %v19_v24 }
  0x40   :  { %366 = vmatpush3.xpose.msk.msra.mxu1 %vm91_vm0, %v19_v24 }
  0x7e   :  { %v75_v25 = vpop.trf.xlu0 }
  0x7f   :  { %329 = vmatprep.mubr.msk.f32.mxu0 %vm91_vm0, %v75_v25 }
  0x82   :  { %v76_v26 = vpop.trf.xlu0 }
  0x83   :  { %330 = vmatmul.mubr.msk.f32.vlgmr.msra.gmra.mxu0 %vm91_vm0, %v76_v26 }
  0x85   :  { %v42_v29 = vpop.permute.xlu1 %41 }
  0x86   :  { %v77_v27 = vpop.trf.xlu0 }
  0x87   :  { %332 = vmatprep.mubr.msk.f32.mxu1 %vm91_vm0, %v77_v27 }
  0x89   :  { %v47_v30 = vpop.permute.xlu1 %46 }
  0x8a   :  { %v78_v28 = vpop.trf.xlu0 }
  0x8b   :  { %333 = vmatmul.mubr.msk.f32.vlgmr.msra.gmra.mxu1 %vm91_vm0, %v78_v28 }
  0x8d   :  { %v52_v33 = vpop.permute.xlu1 %51 }
  0x91   :  { %v57_v36 = vpop.permute.xlu1 %56 }
 0x143   :  { %v331_v31 = vpop.f32.mrf.mxu0 }
 0x144   :  { %v224_v32 = vadd.f32 %v331_v31, %v47_v30 }
 0x145   :  { %v218_v34 = vpop.f32.mrf.mxu0 }
 0x146   :  { %238 = vst [vmem:[#allocation2 + $0x8] sm:$0xff] %v224_v32  ;;  %v219_v35 = vadd.f32 %v218_v34, %v42_v29 }
 0x148   :  { %237 = vst [vmem:[#allocation2] sm:$0xff] %v219_v35 }
 0x14b   :  { %v334_v37 = vpop.f32.mrf.mxu1 }
 0x14c   :  { %v234_v38 = vadd.f32 %v334_v37, %v57_v36 }
 0x14d   :  { %v228_v39 = vpop.f32.mrf.mxu1 }
 0x14e   :  { %240 = vst [vmem:[#allocation2 + $0x18] sm:$0x7f] %v234_v38  ;;  %v229_v40 = vadd.f32 %v228_v39, %v52_v33 }
 0x150   :  { %239 = vst [vmem:[#allocation2 + $0x10] sm:$0xff] %v229_v40 }
 0x151   :  { %385 = shalt.err (!%p382_p4)
}
 0x152   :  { %s398_s5 = smov 128   ;;  %s399_s6 = smov 8  }
 0x153   :  { %252 = dma.vmem_to_hbm [thread:$0]  %s247_s4, 512, %s566_s3, [#allocation3], %s398_s5, %s398_s5, %s399_s6  }
 0x154   :  { %394 = dma.done.wait [#allocation3], 512  }
 0x155   :  { %395 = vsyncadd [#allocation3], 4294966784 }
 0x156   :  { %256 = vsyncpa [#allocation3], 1 }

</bundles_post_ra>
